<compile_context>
chip_gen: v6e
topology: v6e:2x2x1
jax: 0.10.0
libtpu: 0.0.40
codegen_flags: <defaults>
</compile_context>

<pallas_src>
import numpy as np
import jax
import jax.numpy as jnp
from jax.experimental import pallas as pl
from jax.experimental.pallas import tpu as pltpu

NUMBER_MODALITY = 4
NUMBER_TARGETS = 3
NUM_DIFFUSION_TIMESTEPS = 1000

_LANES = 128
_PAD_UNIT = 8 * _LANES          # pad flattened per-batch volume to a (8,128) vreg multiple
_TILE_ROWS = 1024               # 1024 x 128 f32 = 512 KiB/block; 3 streams x 2 bufs ~ 3 MiB


# ----------------------------------------------------------------------------
# Diffusion schedule: matches get_named_beta_schedule('linear', 1000) and the
# GaussianDiffusion derived quantities (float64 numpy, used as float32 like
# _extract_into_tensor(...).float()).  SpacedDiffusion(space_timesteps(1000,[1000]))
# keeps all 1000 steps, so the schedule is unchanged.
# ----------------------------------------------------------------------------
def make_linear_schedule(num_steps=NUM_DIFFUSION_TIMESTEPS):
    scale = 1000.0 / num_steps
    beta_start = scale * 0.0001
    beta_end = scale * 0.02
    betas = np.linspace(beta_start, beta_end, num_steps, dtype=np.float64)
    alphas = 1.0 - betas
    alphas_cumprod = np.cumprod(alphas, axis=0)
    return (
        jnp.asarray(np.sqrt(alphas_cumprod), dtype=jnp.float32),
        jnp.asarray(np.sqrt(1.0 - alphas_cumprod), dtype=jnp.float32),
    )


# ----------------------------------------------------------------------------
# Pallas kernel: out = a[b] * x + s[b] * noise   (math in f32, cast on store)
#   a_ref, s_ref : (B,) f32 scalar-prefetch (SMEM)
#   x_ref, n_ref : (TM, 128) VMEM tiles
# Grid = (M_tiles, B): long axis first so megacore (v7x) splits it.
# ----------------------------------------------------------------------------
def _q_sample_kernel(a_ref, s_ref, x_ref, n_ref, out_ref):
    b = pl.program_id(1)
    a = a_ref[b]
    s = s_ref[b]
    x = x_ref[...].astype(jnp.float32)
    n = n_ref[...].astype(jnp.float32)
    out_ref[...] = (a * x + s * n).astype(out_ref.dtype)


def q_sample_pallas(x, noise, t, sqrt_ac, sqrt_omac, tile_rows=_TILE_ROWS):
    """x, noise: (B, C, D, H, W); t: (B,) int32.  Returns x_t with x's shape/dtype."""
    orig_shape = x.shape
    B = orig_shape[0]
    total = int(np.prod(orig_shape[1:]))
    pad = (-total) % _PAD_UNIT

    xf = x.reshape(B, total)
    nf = noise.reshape(B, total)
    if pad:
        xf = jnp.pad(xf, ((0, 0), (0, pad)))
        nf = jnp.pad(nf, ((0, 0), (0, pad)))
    M = (total + pad) // _LANES                      # multiple of 8 by construction
    x3 = xf.reshape(B, M, _LANES)
    n3 = nf.reshape(B, M, _LANES)

    TM = min(tile_rows, M)                           # TM is a multiple of 8
    grid = (pl.cdiv(M, TM), B)                       # long axis first (megacore)

    # Per-batch schedule scalars gathered once in the wrapper (no SMEM tables).
    a_vec = sqrt_ac[t].astype(jnp.float32)           # (B,)
    s_vec = sqrt_omac[t].astype(jnp.float32)         # (B,)

    spec = pl.BlockSpec((None, TM, _LANES), lambda m, b, *_: (b, m, 0))

    out3 = pl.pallas_call(
        _q_sample_kernel,
        out_shape=jax.ShapeDtypeStruct((B, M, _LANES), x.dtype),
        grid_spec=pltpu.PrefetchScalarGridSpec(
            num_scalar_prefetch=2,                   # a_vec, s_vec -> SMEM
            grid=grid,
            in_specs=[spec, spec],
            out_specs=spec,
        ),
        compiler_params=pltpu.CompilerParams(
            dimension_semantics=("parallel", "parallel")),
    )(a_vec, s_vec, x3, n3)

    out = out3.reshape(B, M * _LANES)
    if pad:
        out = out[:, :total]
    return out.reshape(orig_shape)


# ----------------------------------------------------------------------------
# DiffUNet (Pallas) wrapper
# ----------------------------------------------------------------------------
class DiffUNetPallas:
    def __init__(self):
        self.sqrt_ac, self.sqrt_omac = make_linear_schedule()
        # TODO(synk): BasicUNetEncoder / BasicUNetDe parameters & forward are not part
        # of the provided module source, so 'denoise' / 'ddim_sample' are not faked.

    def forward(self, image=None, x=None, pred_type=None, step=None, rng=None):
        if pred_type == "q_sample":
            assert x is not None and rng is not None
            k_noise, k_t = jax.random.split(rng)
            # noise = torch.randn_like(x)
            noise = jax.random.normal(k_noise, x.shape, dtype=x.dtype)
            # UniformSampler.sample: t ~ Uniform{0..T-1}, weights == 1.0 (unused here)
            t = jax.random.randint(k_t, (x.shape[0],), 0, NUM_DIFFUSION_TIMESTEPS,
                                   dtype=jnp.int32)
            xt = q_sample_pallas(x, noise, t, self.sqrt_ac, self.sqrt_omac)
            return xt, t, noise
        elif pred_type in ("denoise", "ddim_sample"):
            # TODO(synk): requires BasicUNetEncoder / BasicUNetDe (not provided).
            raise NotImplementedError(pred_type)
        else:
            raise ValueError(f"unknown pred_type: {pred_type}")


# ----------------------------------------------------------------------------
# Pure-JAX reference
# ----------------------------------------------------------------------------
def q_sample_ref(x, noise, t, sqrt_ac, sqrt_omac):
    a = sqrt_ac[t].reshape(-1, 1, 1, 1, 1)
    s = sqrt_omac[t].reshape(-1, 1, 1, 1, 1)
    return a * x + s * noise


if __name__ == "__main__":
    key = jax.random.PRNGKey(0)
    k_x, k_fwd, k_x2, k_fwd2 = jax.random.split(key, 4)

    model = DiffUNetPallas()

    # --- case 1: lane-aligned small volume (B, number_targets, D, H, W) ------
    B, C, D, H, W = 2, NUMBER_TARGETS, 8, 16, 16
    x = jax.random.normal(k_x, (B, C, D, H, W), dtype=jnp.float32)
    xt, t, noise = model.forward(x=x, pred_type="q_sample", rng=k_fwd)
    xt = jax.block_until_ready(xt)
    assert xt.shape == x.shape and t.shape == (B,) and noise.shape == x.shape
    ref = q_sample_ref(x, noise, t, model.sqrt_ac, model.sqrt_omac)
    np.testing.assert_allclose(np.asarray(xt), np.asarray(ref), rtol=1e-6, atol=1e-6)

    # --- case 2: ragged volume exercising the padding path --------------------
    x2 = jax.random.normal(k_x2, (2, NUMBER_TARGETS, 5, 7, 9), dtype=jnp.float32)
    xt2, t2, noise2 = model.forward(x=x2, pred_type="q_sample", rng=k_fwd2)
    xt2 = jax.block_until_ready(xt2)
    ref2 = q_sample_ref(x2, noise2, t2, model.sqrt_ac, model.sqrt_omac)
    np.testing.assert_allclose(np.asarray(xt2), np.asarray(ref2), rtol=1e-6, atol=1e-6)

    print("KERNEL_OK")
</pallas_src>

<mosaic_0001>
module attributes {stable_mosaic.version = 11 : i64} {
  func.func @_q_sample_kernel(%arg0: i32, %arg1: i32, %arg2: memref<2xf32, #tpu.memory_space<smem>>, %arg3: memref<2xf32, #tpu.memory_space<smem>>, %arg4: memref<1x48x128xf32, #tpu.memory_space<vmem>>, %arg5: memref<1x48x128xf32, #tpu.memory_space<vmem>>, %arg6: memref<1x48x128xf32, #tpu.memory_space<vmem>>) attributes {dimension_semantics = [#tpu.dimension_semantics<parallel>, #tpu.dimension_semantics<parallel>], iteration_bounds = array<i64: 1, 2>, scalar_prefetch = 2 : i64, scratch_operands = 0 : i64, tpu.core_type = #tpu.core_type<tc>, window_params = [{transform_indices = @transform_0, window_bounds = array<i64: 1, 48, 128>}, {transform_indices = @transform_1, window_bounds = array<i64: 1, 48, 128>}, {transform_indices = @transform_2, window_bounds = array<i64: 1, 48, 128>}]} {
    %0 = arith.index_cast %arg1 : i32 to index
    %1 = memref.load %arg2[%0] : memref<2xf32, #tpu.memory_space<smem>>
    %2 = arith.index_cast %arg1 : i32 to index
    %3 = memref.load %arg3[%2] : memref<2xf32, #tpu.memory_space<smem>>
    %c0 = arith.constant 0 : index
    %c0_0 = arith.constant 0 : index
    %c0_1 = arith.constant 0 : index
    %4 = vector.load %arg4[%c0, %c0_0, %c0_1] : memref<1x48x128xf32, #tpu.memory_space<vmem>>, vector<1x48x128xf32>
    %5 = vector.shape_cast %4 : vector<1x48x128xf32> to vector<48x128xf32>
    %c0_2 = arith.constant 0 : index
    %c0_3 = arith.constant 0 : index
    %c0_4 = arith.constant 0 : index
    %6 = vector.load %arg5[%c0_2, %c0_3, %c0_4] : memref<1x48x128xf32, #tpu.memory_space<vmem>>, vector<1x48x128xf32>
    %7 = vector.shape_cast %6 : vector<1x48x128xf32> to vector<48x128xf32>
    %8 = vector.broadcast %1 : f32 to vector<48x128xf32>
    %9 = arith.mulf %8, %5 : vector<48x128xf32>
    %10 = vector.broadcast %3 : f32 to vector<48x128xf32>
    %11 = arith.mulf %10, %7 : vector<48x128xf32>
    %12 = arith.addf %9, %11 : vector<48x128xf32>
    %c0_5 = arith.constant 0 : index
    %c0_6 = arith.constant 0 : index
    %c0_7 = arith.constant 0 : index
    %13 = vector.load %arg6[%c0_5, %c0_6, %c0_7] : memref<1x48x128xf32, #tpu.memory_space<vmem>>, vector<1x48x128xf32>
    %14 = vector.shape_cast %13 : vector<1x48x128xf32> to vector<48x128xf32>
    %15 = vector.shape_cast %12 : vector<48x128xf32> to vector<1x48x128xf32>
    tpu.vector_store %arg6[%c0_5, %c0_6, %c0_7], %15 {strides = array<i32>} : memref<1x48x128xf32, #tpu.memory_space<vmem>>, vector<1x48x128xf32>,
    return
  }
  func.func @transform_0(%arg0: i32, %arg1: i32, %arg2: memref<2xf32, #tpu.memory_space<smem>>, %arg3: memref<2xf32, #tpu.memory_space<smem>>) -> (i32, i32, i32) {
    %c0_i32 = arith.constant 0 : i32
    %c0_i32_0 = arith.constant 0 : i32
    return %arg1, %arg0, %c0_i32 : i32, i32, i32
  }
  func.func @transform_1(%arg0: i32, %arg1: i32, %arg2: memref<2xf32, #tpu.memory_space<smem>>, %arg3: memref<2xf32, #tpu.memory_space<smem>>) -> (i32, i32, i32) {
    %c0_i32 = arith.constant 0 : i32
    %c0_i32_0 = arith.constant 0 : i32
    return %arg1, %arg0, %c0_i32 : i32, i32, i32
  }
  func.func @transform_2(%arg0: i32, %arg1: i32, %arg2: memref<2xf32, #tpu.memory_space<smem>>, %arg3: memref<2xf32, #tpu.memory_space<smem>>) -> (i32, i32, i32) {
    %c0_i32 = arith.constant 0 : i32
    %c0_i32_0 = arith.constant 0 : i32
    return %arg1, %arg0, %c0_i32 : i32, i32, i32
  }
}

</mosaic_0001>

<bundles_post_ra>
// kernel: tpu_custom_call.1
= control target key start
LH: loop header
LB: loop body
LE: loop exit
PB: predicated region body
PF: predicated region fallthrough
CT: control target
= control target key end

     0   :  { %s659_s15 = smov [#allocation3]   ;;  %s890_s0 = inlined_call_operand.hbm [shape: f32[2], index: 0, kind: input, shape index: {}]   ;;  %s891_s2 = inlined_call_operand.hbm [shape: f32[2,48,128], index: 2, kind: input, shape index: {}]   ;;  %s892_s3 = inlined_call_operand.hbm [shape: f32[2,48,128], index: 3, kind: input, shape index: {}]   ;;  %s893_s4 = inlined_call_operand.hbm [shape: f32[2,48,128], index: 4, kind: output, shape index: {}]   ;;  %s894_s1 = inlined_call_operand.vmem [shape: f32[2], index: 1, kind: input, shape index: {}]  }
   0x1   :  { %10 = dma.hbm_to_smem %s890_s0, 16, %s659_s15, [#allocation2] }
   0x2   :  { %s11_s20 = sshll.u32 %s894_s1, 4  ;;  %s12_s20 = int_to_ptr.vmem [resolvable:$true] %s11_s20 }
   0x3   :  { %s503_s21 = scalar_lea.vmem %s12_s20, 16  ;;  %p508_p1 = scmp.lt.s32.totalorder %s12_s20, %s12_s20 }
   0x4   :  { %p504_p0 = scmp.ne.s32.totalorder %s12_s20, %s503_s21  ;;  %p509_p2 = scmp.lt.s32.totalorder %s503_s21, %s503_s21 }
   0x6   :  { %p510_p3 = por %p509_p2, %p508_p1 }
   0x8   :  { %p511_p4 = pnand %p510_p3, %p504_p0 }
   0xa   :  { %514 = shalt.err (!%p511_p4)  }
   0xb   :  { %s660_s22 = smov [#allocation4]  }
   0xc   :  { %14 = dma.vmem_to_smem %s12_s20, 16, %s660_s22, [#allocation2] }
   0xd   :  { %621 = dma.done.wait [#allocation2], 32 }
   0xe   :  { %622 = vsyncadd [#allocation2], 4294967264 }
   0xf   :  { %16 = sfence }
  0x10   :  { %17 = vsyncpa [#allocation6], 0 }
  0x11   :  { %19 = vsyncpa [#allocation6 + $0x1], 0 }
  0x12   :  { %20 = vsyncpa [#allocation9], 0 }
  0x13   :  { %22 = vsyncpa [#allocation9 + $0x1], 0 }
  0x14   :  { %23 = vsyncpa [#allocation7], 0 }
  0x15   :  { %25 = vsyncpa [#allocation7 + $0x1], 0  ;;  %s699_s0 = smov 0   ;;  %s701_s1 = smov 0  }
  0x16   :  { %s703_s23 = smov 0   ;;  %s705_s24 = smov 0  }
  0x17   :  { %s707_s25 = smov 0   ;;  %s709_s26 = smov 0  }
  0x18 LB: > { %s406_s27 = sadd.s32 4294967295, %s657_s26   ;;  %s407_s28 = sadd.s32 4294967294, %s657_s26   ;;  %s657_s26 = sphi %s709_s26, %s31_s26   ;;  %s653_s25 = sphi %s707_s25, %s905_s25   ;;  %s649_s24 = sphi %s705_s24, %s904_s24   ;;  %s645_s23 = sphi %s703_s23, %s903_s23   ;;  %s641_s1 = sphi %s701_s1, %s902_s1   ;;  %s637_s0 = sphi %s699_s0, %s901_s0  }
  0x19   : > { %s40_s29 = sadd.s32 1, %s653_s25  ;;  %s52_s30 = sadd.s32 1, %s645_s23 }
  0x1a   : > { %p41_p5 = scmp.ge.s32.totalorder %s40_s29, 2  ;;  %p59_p6 = scmp.ne.s32.totalorder %s645_s23, %s641_s1 }
  0x1b   : > { %p60_p7 = scmp.eq.s32.totalorder %s657_s26, 0  ;;  %p65_p8 = scmp.ne.s32.totalorder %s641_s1, %s637_s0 }
  0x1c   : > { %s907_s29 = smov (%p41_p5, %s40_s29), 0  ;;  %p66_p10 = scmp.eq.s32.totalorder %s406_s27, 0 }
  0x1d   : > { %p740_p9 = por %p60_p7, %p59_p6  ;;  %s47_s6 = ssub.s32 %s653_s25, %s907_s29 }
  0x1e   : > { %p119_p11 = scmp.eq.s32.totalorder %s406_s27, 1  ;;  %p50_p12 = scmp.eq.s32.totalorder %s47_s6, 0 }
  0x1f   : > { %p746_p13 = por %p66_p10, %p65_p8  ;;  %p125_p1 = scmp.eq.s32.totalorder %s407_s28, 1 }
  0x20   : > { %p750_p0 = por %p119_p11, %p59_p6  ;;  %p409_p3 = scmp.ge.s32.totalorder %s657_s26, 2 }
  0x21   : > { %s755_s9 = scalar_select %p50_p12, %s645_s23, %s52_s30  }
  0x22   : > { %p757_p2 = por %p125_p1, %p65_p8  ;;  %p439_p4 = scmp.lt.s32.totalorder %s657_s26, 2 }
  0x23   : > { %s764_s11 = sand.u32 1, %s645_s23   ;;  %s417_s13 = smul.u32 768, %s653_s25 }
  0x24   : > { %s416_s12 = smul.u32 48, %s764_s11  ;;  %p770_p5 = pnand %p439_p4, %p740_p9 }
  0x25   : > { %s157_s17 = scalar_lea.hbm %s891_s2, %s417_s13  ;;  %p412_p6 = scmp.ge.s32.totalorder %s657_s26, 1 }
  0x26   : > { %s149_s18 = scalar_lea.vmem [#allocation5], %s416_s12  ;;  %s146_s20 = scalar_lea.sflag [#allocation6], %s764_s11 }
  0x27   : > { %s158_s19 = sshll.u32 %s149_s18, 4  ;;  %p517_p7 = pneg %p770_p5  ;;  %s159_s19 = int_to_ptr.vmem [resolvable:$true] %s158_s19 }
  0x28   : > { %s528_s21 = scalar_lea.vmem %s159_s19, 768  ;;  %s661_s22 = smov [#allocation5]  }
  0x29   : > { %p529_p8 = scmp.ne.s32.totalorder %s159_s19, %s528_s21  ;;  %s533_s27 = sshll.u32 %s661_s22, 4  ;;  %s534_s27 = int_to_ptr.vmem [resolvable:$false] %s533_s27 }
  0x2a   : > { %s535_s28 = scalar_lea.vmem %s534_s27, 1536  ;;  %p536_p11 = scmp.lt.s32.totalorder %s159_s19, %s534_s27 }
  0x2b   : > { %p531_p9 = pnand %p529_p8, %p517_p7  ;;  %p537_p12 = scmp.lt.s32.totalorder %s535_s28, %s528_s21 }
  0x2d   : > { %p532_p10 = pneg %p531_p9  ;;  %p538_p1 = por %p537_p12, %p536_p11 }
  0x2f   : > { %p539_p4 = pnand %p538_p1, %p532_p10 }
  0x31   : > { %542 = shalt.err (!%p539_p4)
}
  0x32   : > { %s662_s30 = smov 128   ;;  %s663_s5 = smov 8  }
  0x33   : > { %431 = dma.hbm_to_vmem [thread:$0]  (!%p770_p5), %s157_s17, 768, %s159_s19, %s146_s20, %s662_s30, %s662_s30, %s663_s5  }
  0x34   : > { %p189_p8 = scmp.lt.s32.totalorder %s657_s26, 3  ;;  %s180_s16 = scalar_lea.hbm %s892_s3, %s417_s13 }
  0x35   : > { %s172_s21 = scalar_lea.vmem [#allocation8], %s416_s12  ;;  %s169_s27 = scalar_lea.sflag [#allocation9], %s764_s11 }
  0x36   : > { %p798_p9 = pnand %p412_p6, %p189_p8  ;;  %s181_s22 = sshll.u32 %s172_s21, 4  ;;  %s182_s22 = int_to_ptr.vmem [resolvable:$true] %s181_s22 }
  0x37   : > { %s556_s28 = scalar_lea.vmem %s182_s22, 768  ;;  %s664_s17 = smov [#allocation8]  }
  0x38   : > { %p557_p10 = scmp.ne.s32.totalorder %s182_s22, %s556_s28  ;;  %s561_s19 = sshll.u32 %s664_s17, 4  ;;  %s562_s19 = int_to_ptr.vmem [resolvable:$false] %s561_s19 }
  0x39   : > { %s563_s13 = scalar_lea.vmem %s562_s19, 1536  ;;  %p564_p1 = scmp.lt.s32.totalorder %s182_s22, %s562_s19 }
  0x3a   : > { %p559_p11 = pnand %p557_p10, %p517_p7  ;;  %p565_p6 = scmp.lt.s32.totalorder %s563_s13, %s556_s28 }
  0x3c   : > { %p560_p12 = pneg %p559_p11  ;;  %p566_p4 = por %p565_p6, %p564_p1 }
  0x3e   : > { %p567_p8 = pnand %p566_p4, %p560_p12 }
  0x40   : > { %570 = shalt.err (!%p567_p8)
}
  0x41   : > { %434 = dma.hbm_to_vmem [thread:$0]  (!%p770_p5), %s180_s16, 768, %s182_s22, %s169_s27, %s662_s30, %s662_s30, %s663_s5  }
  0x42   : > { %193 = sbr.rel (%p798_p9) target bundleno = 102 (0x66), region = 28  ;;  %s813_s11 = sand.u32 (!%p798_p9), 1, %s641_s1  }
  0x43   : > { %s420_s12 = smul.u32 (!%p798_p9), 48, %s813_s11  ;;  %s196_s20 = scalar_lea.sflag (!%p798_p9), [#allocation6], %s813_s11 }
  0x45   : > { %s817_s6 = scalar_lea.vmem (!%p798_p9), [#allocation5], %s420_s12 }
  0x47   : > { %624 = dma.done.wait (%p746_p13), %s196_s20, 768  }
  0x48   : > { %626 = vsyncadd (%p746_p13), %s196_s20, 4294966528  ;;  %s205_s14 = scalar_lea.sflag [#allocation9], %s813_s11  ;;  %s208_s30 = scalar_lea.vmem [#allocation8], %s420_s12 }
  0x49   : > { %628 = dma.done.wait (%p746_p13), %s205_s14, 768  }
  0x4a   : > { %630 = vsyncadd (%p746_p13), %s205_s14, 4294966528  ;;  %s237_s5 = sld [smem:[#allocation3 + %s649_s24]]  ;;  %v239_v0 = vld [vmem:[%s817_s6] sm:$0xff]  ;;  %v240_v3 = vld [vmem:[%s817_s6 + $0x8] sm:$0xff]  ;;  %s233_s7 = scalar_lea.vmem [#allocation10], %s420_s12 }
  0x4b   : > { %s238_s15 = sld [smem:[#allocation4 + %s649_s24]]  ;;  %v245_v1 = vld [vmem:[%s208_s30] sm:$0xff]  ;;  %v246_v6 = vld [vmem:[%s208_s30 + $0x8] sm:$0xff]  ;;  %v241_v8 = vld [vmem:[%s817_s6 + $0x10] sm:$0xff]  ;;  %s293_s16 = sshll.u32 %s233_s7, 4  ;;  %s837_s16 = int_to_ptr.vmem [resolvable:$true] %s293_s16 }
  0x4c   : > { %v247_v9 = vld [vmem:[%s208_s30 + $0x10] sm:$0xff]  ;;  %v242_v14 = vld [vmem:[%s817_s6 + $0x18] sm:$0xff]  ;;  %v243_v16 = vld [vmem:[%s817_s6 + $0x20] sm:$0xff]  ;;  %s421_s18 = smul.u32 768, %s649_s24  ;;  %s278_s27 = scalar_lea.sflag [#allocation7], %s813_s11 }
  0x4d   : > { %v248_v15 = vld [vmem:[%s208_s30 + $0x18] sm:$0xff]  ;;  %v249_v19 = vld [vmem:[%s208_s30 + $0x20] sm:$0xff]  ;;  %v244_v21 = vld [vmem:[%s817_s6 + $0x28] sm:$0xff]  ;;  %s571_s28 = scalar_lea.vmem %s837_s16, 768  ;;  %s665_s17 = smov [#allocation10]  }
  0x4e   : > { %v250_v22 = vld [vmem:[%s208_s30 + $0x28] sm:$0xff]  ;;  %s842_s22 = scalar_lea.hbm %s893_s4, %s421_s18  ;;  %p572_p13 = scmp.ne.s32.totalorder %s837_s16, %s571_s28 }
  0x4f   : > { %s575_s19 = sshll.u32 %s665_s17, 4  ;;  %s576_s19 = int_to_ptr.vmem [resolvable:$false] %s575_s19 }
  0x50   : > { %v251_v2 = vstv %s237_s5  ;;  %p573_p5 = pnand %p572_p13, %p750_p0  ;;  %s577_s13 = scalar_lea.vmem %s576_s19, 1536 }
  0x51   : > { %v252_v4 = vmul.f32 %v251_v2, %v239_v0  ;;  %v258_v5 = vstv %s238_s15  ;;  %v253_v7 = vmul.f32 %v251_v2, %v240_v3  ;;  %v254_v12 = vmul.f32 %v251_v2, %v241_v8  ;;  %p578_p9 = scmp.lt.s32.totalorder %s837_s16, %s576_s19  ;;  %p579_p10 = scmp.lt.s32.totalorder %s577_s13, %s571_s28 }
  0x52   : > { %v259_v10 = vmul.f32 %v258_v5, %v245_v1  ;;  %v260_v11 = vmul.f32 %v258_v5, %v246_v6  ;;  %v261_v13 = vmul.f32 %v258_v5, %v247_v9  ;;  %v255_v17 = vmul.f32 %v251_v2, %v242_v14  ;;  %p574_p7 = pneg %p573_p5 }
  0x53   : > { %v262_v18 = vmul.f32 %v258_v5, %v248_v15  ;;  %v256_v20 = vmul.f32 %v251_v2, %v243_v16  ;;  %v263_v26 = vmul.f32 %v258_v5, %v249_v19  ;;  %v257_v28 = vmul.f32 %v251_v2, %v244_v21  ;;  %p580_p11 = por %p579_p10, %p578_p9 }
  0x54   : > { %v265_v23 = vadd.f32 %v259_v10, %v252_v4  ;;  %v266_v24 = vadd.f32 %v260_v11, %v253_v7  ;;  %v267_v25 = vadd.f32 %v261_v13, %v254_v12  ;;  %v264_v29 = vmul.f32 %v258_v5, %v250_v22 }
  0x55   : > { %v268_v27 = vadd.f32 %v262_v18, %v255_v17  ;;  %v269_v30 = vadd.f32 %v263_v26, %v256_v20  ;;  %p581_p12 = pnand %p580_p11, %p574_p7 }
  0x56   : > { %271 = vst [vmem:[%s233_s7] sm:$0xff] %v265_v23  ;;  %272 = vst [vmem:[%s233_s7 + $0x8] sm:$0xff] %v266_v24  ;;  %v270_v31 = vadd.f32 %v264_v29, %v257_v28 }
  0x57   : > { %273 = vst [vmem:[%s233_s7 + $0x10] sm:$0xff] %v267_v25  ;;  %274 = vst [vmem:[%s233_s7 + $0x18] sm:$0xff] %v268_v27 }
  0x58   : > { %275 = vst [vmem:[%s233_s7 + $0x20] sm:$0xff] %v269_v30  ;;  %276 = vst [vmem:[%s233_s7 + $0x28] sm:$0xff] %v270_v31 }
  0x59   : > { %584 = shalt.err (!%p581_p12)
}
  0x5a   : > { %s585_s12 = scalar_lea.hbm %s842_s22, 768  ;;  %s589_s14 = scalar_lea.hbm %s893_s4, 1536 }
  0x5b   : > { %p586_p1 = scmp.ne.s32.totalorder %s842_s22, %s585_s12  ;;  %p590_p8 = scmp.lt.s32.totalorder %s842_s22, %s893_s4 }
  0x5c   : > { %p591_p13 = scmp.lt.s32.totalorder %s589_s14, %s585_s12 }
  0x5d   : > { %p587_p6 = pnand %p586_p1, %p750_p0 }
  0x5e   : > { %p592_p5 = por %p591_p13, %p590_p8 }
  0x5f   : > { %p588_p4 = pneg %p587_p6 }
  0x61   : > { %p593_p7 = pnand %p592_p5, %p588_p4 }
  0x63   : > { %596 = shalt.err (!%p593_p7)
}
  0x64   : > { %s666_s15 = smov 128   ;;  %s667_s7 = smov 8  }
  0x65   : > { %426 = dma.vmem_to_hbm [thread:$0]  (%p750_p0), %s837_s16, 768, %s842_s22, %s278_s27, %s666_s15, %s666_s15, %s667_s7  }
  0x66 PF: > { %s308_s18 = sand.u32 1, %s637_s0   ;;  %p436_p9 = pnand %p409_p3, %p757_p2 }
  0x67   : > { %s309_s24 = scalar_lea.sflag [#allocation7], %s308_s18 }
  0x68   : > { %p437_p10 = pneg %p436_p9 }
  0x6a   : > { %632 = dma.done.wait (%p437_p10), %s309_s24, 768  }
  0x6b   : > { %634 = vsyncadd (%p437_p10), %s309_s24, 4294966528  ;;  %s31_s26 = sadd.s32 1, %s657_s26   ;;  %s901_s0 = smov %s641_s1 }
  0x6c   : > { %p28_p11 = scmp.ge.s32.totalorder %s31_s26, 4   ;;  %s902_s1 = smov %s645_s23 }
  0x6d   : > { %s903_s23 = smov %s755_s9  ;;  %s904_s24 = smov %s653_s25 }
  0x6e   : > { %s905_s25 = smov %s907_s29  ;;  %30 = sbr.rel (!%p28_p11) target bundleno = 24 (0x18), region = 86 }
  0x73   :  { %314 = vsyncpa [#allocation6], 1 }
  0x74   :  { %316 = vsyncpa [#allocation6 + $0x1], 1 }
  0x75   :  { %317 = vsyncpa [#allocation9], 1 }
  0x76   :  { %319 = vsyncpa [#allocation9 + $0x1], 1 }
  0x77   :  { %320 = vsyncpa [#allocation7], 1 }
  0x78   :  { %322 = vsyncpa [#allocation7 + $0x1], 1 }

</bundles_post_ra>
